<compile_context>
chip_gen: v7x
topology: tpu7x:2x2x1
jax: 0.10.0
libtpu: 0.0.40
codegen_flags: <defaults>
</compile_context>

<pallas_src>
import math
import functools

import jax
import jax.numpy as jnp
from jax import lax
from jax.experimental import pallas as pl
from jax.experimental.pallas import tpu as pltpu

MODEL_DIM = 128     # stand-in for the original MODEL_DIM/dim (lane-dense)
NUM_CLASSES = 10
MLP_DIM = 256
MAX_LEN = 64        # positional-encoding table length (original uses 5000)


# ------------------------------ Pallas kernel -------------------------------

def _fused_seqtrans_kernel(x_ref, fcw_ref, fcb_ref, pimg_ref, add_ref,
                           wqkv_ref, wo_ref, w1_ref, b1_ref, w2_ref, b2_ref,
                           o_ref):
    """One grid step == one sequence.

    Fuses: conv head (fc stand-in), image/label token interleave, positional
    encoding add, a single self-attention + ReLU-MLP encoder block and the
    final last-token selection.  All matmuls are 2-D; large projections use
    bf16 operands with f32 accumulation, elementwise math stays f32.
    """
    d = wo_ref.shape[0]

    # conv_model head stand-in:  (nt, F) @ (F, D) + (1, D)
    feats = jnp.dot(x_ref[...].astype(jnp.bfloat16), fcw_ref[...],
                    preferred_element_type=jnp.float32) + fcb_ref[...]

    # build_seq: place image features at even token rows via a tiny scatter
    # matmul; add_ref already carries label embeddings at odd rows + the
    # per-sequence positional encoding.
    tokens = jnp.dot(pimg_ref[...], feats,
                     preferred_element_type=jnp.float32) + add_ref[...]
    L = tokens.shape[0]

    # fused QKV projection: one (L, D) @ (D, 3D) matmul, lane-dense output.
    qkv = jnp.dot(tokens.astype(jnp.bfloat16), wqkv_ref[...],
                  preferred_element_type=jnp.float32)
    q = qkv[:, :d] * (1.0 / math.sqrt(d))      # fold 1/sqrt(d) into q
    k = qkv[:, d:2 * d]
    v = qkv[:, 2 * d:]

    # attention (tiny LxL scores; keep in f32, softmax in f32)
    s = lax.dot_general(q, k, (((1,), (1,)), ((), ())),
                        preferred_element_type=jnp.float32)      # (L, L)
    s = s - jnp.max(s, axis=-1, keepdims=True)
    p = jnp.exp(s)
    p = p * pl.reciprocal(jnp.sum(p, axis=-1, keepdims=True), approx=True)
    ctx = jnp.dot(p, v, preferred_element_type=jnp.float32)      # (L, D)
    attn = jnp.dot(ctx.astype(jnp.bfloat16), wo_ref[...],
                   preferred_element_type=jnp.float32)
    x1 = tokens + attn

    # ReLU MLP, 2-D matmuls with batch*tokens folded into M
    h = jnp.dot(x1.astype(jnp.bfloat16), w1_ref[...],
                preferred_element_type=jnp.float32) + b1_ref[...]
    h = jnp.maximum(h, 0.0)
    ffn = jnp.dot(h.astype(jnp.bfloat16), w2_ref[...],
                  preferred_element_type=jnp.float32) + b2_ref[...]
    out_tok = x1 + ffn                                           # (L, D)

    # to_cls_token(x[:, -1])
    o_ref[...] = out_tok[L - 1:L, :]


# ----------------------------- model forward --------------------------------

@functools.partial(jax.jit, static_argnums=(3, 4))
def seq_trans_forward(params, seq_x, seq_y, bs, nt):
    # Assumes nt > 1 (interleaved branch of the original forward).
    n_seq = bs // nt
    dim = MODEL_DIM
    L = nt * 2
    feat_in = seq_x.shape[1] * seq_x.shape[2] * seq_x.shape[3]

    # ---- conv feature extractor input ----
    # TODO(synk): timm 'resnet34' backbone is an external model not defined in
    # the source; replaced by flatten + linear head (fc->MODEL_DIM analogue),
    # computed inside the fused kernel.
    x_img = seq_x.reshape(n_seq, nt, feat_in).astype(jnp.float32)

    # ---- label handling (tiny XLA gather feeding the kernel) ----
    idx = jnp.array([nt * i + nt - 1 for i in range(n_seq)], dtype=jnp.int32)
    seq_y_flat = seq_y.reshape(bs).at[idx].set(NUM_CLASSES - 1)
    y = params['label_embed'][seq_y_flat] * dim ** (-0.5)        # (bs, dim)

    # labels at odd token rows + per-sequence positional encoding broadcast
    # (faithful to the original, which slices the PE table by the batch axis
    #  and broadcasts over token positions).
    add_rows = jnp.zeros((n_seq, L, dim), jnp.float32)
    add_rows = add_rows.at[:, 1::2, :].set(y.reshape(n_seq, nt, dim))
    add_rows = add_rows + params['pos_encoding'][:n_seq][:, None, :]

    # scatter matrix placing image features at even token rows (applied
    # in-kernel with one tiny matmul so conv features never round-trip HBM).
    r = jnp.arange(nt)
    p_img = jnp.zeros((L, nt), jnp.float32).at[2 * r, r].set(1.0)

    # ---- single fused pallas_call, one grid step per sequence ----
    # TODO(synk): VAS_Transformer (12 layers, multi-head, LayerNorm, dropout)
    # is not defined in the provided source; stand-in is one self-attention +
    # ReLU-MLP encoder block.
    out = pl.pallas_call(
        _fused_seqtrans_kernel,
        out_shape=jax.ShapeDtypeStruct((n_seq, 1, dim), jnp.float32),
        grid_spec=pltpu.PrefetchScalarGridSpec(
            num_scalar_prefetch=0,
            grid=(n_seq,),
            in_specs=[
                pl.BlockSpec((None, nt, feat_in), lambda s: (s, 0, 0)),
                pl.BlockSpec(params['fc_w'].shape, lambda s: (0, 0)),
                pl.BlockSpec(params['fc_b'].shape, lambda s: (0, 0)),
                pl.BlockSpec((L, nt), lambda s: (0, 0)),
                pl.BlockSpec((None, L, dim), lambda s: (s, 0, 0)),
                pl.BlockSpec(params['w_qkv'].shape, lambda s: (0, 0)),
                pl.BlockSpec(params['w_o'].shape, lambda s: (0, 0)),
                pl.BlockSpec(params['w1'].shape, lambda s: (0, 0)),
                pl.BlockSpec(params['b1'].shape, lambda s: (0, 0)),
                pl.BlockSpec(params['w2'].shape, lambda s: (0, 0)),
                pl.BlockSpec(params['b2'].shape, lambda s: (0, 0)),
            ],
            out_specs=pl.BlockSpec((None, 1, dim), lambda s: (s, 0, 0)),
        ),
        compiler_params=pltpu.CompilerParams(
            dimension_semantics=("parallel",)),   # v7x: shard seqs over 2 TCs
    )(x_img, params['fc_w'], params['fc_b'], p_img, add_rows,
      params['w_qkv'], params['w_o'], params['w1'], params['b1'],
      params['w2'], params['b2'])

    return out.reshape(n_seq, dim)                               # (n_seq, dim)


# ----------------------------- param building -------------------------------

def make_pos_encoding(max_len, dim_model):
    positions = jnp.arange(max_len, dtype=jnp.float32)[:, None]
    division = jnp.exp(jnp.arange(0, dim_model, 2, dtype=jnp.float32)
                       * (-math.log(10000.0) / dim_model))
    pe = jnp.zeros((max_len, dim_model), jnp.float32)
    pe = pe.at[:, 0::2].set(jnp.sin(positions * division))
    pe = pe.at[:, 1::2].set(jnp.cos(positions * division))
    return pe


def init_params(key, in_features, dim):
    ks = jax.random.split(key, 6)

    def kaiming(k, shape, fan_in, dtype=jnp.bfloat16):
        w = jax.random.normal(k, shape, jnp.float32) * math.sqrt(2.0 / fan_in)
        return w.astype(dtype)

    return {
        # MXU-operand weights stored bf16 (f32 accumulation in-kernel);
        # biases / embeddings / PE stay f32 (v5e VPU has no bf16 elementwise).
        'fc_w': kaiming(ks[0], (in_features, dim), in_features),
        'fc_b': jnp.zeros((1, dim), jnp.float32),
        'label_embed': jax.random.normal(ks[1], (NUM_CLASSES, dim), jnp.float32),
        'pos_encoding': make_pos_encoding(MAX_LEN, dim),
        'w_qkv': kaiming(ks[2], (dim, 3 * dim), dim),
        'w_o': kaiming(ks[3], (dim, dim), dim),
        'w1': kaiming(ks[4], (dim, MLP_DIM), dim),
        'b1': jnp.zeros((1, MLP_DIM), jnp.float32),
        'w2': kaiming(ks[5], (MLP_DIM, dim), MLP_DIM),
        'b2': jnp.zeros((1, dim), jnp.float32),
    }


# --------------------------------- main --------------------------------------

if __name__ == "__main__":
    key = jax.random.PRNGKey(0)
    k_x, k_y, k_p = jax.random.split(key, 3)

    bs, nt = 8, 4                  # n_seq = 2, L = 8 tokens per sequence
    H = W = 16                     # small stand-in for 105x105
    in_features = 3 * H * W        # 768 (multiple of 128)

    seq_x = jax.random.normal(k_x, (bs, 3, H, W), jnp.float32)          # NCHW
    seq_y = jax.random.randint(k_y, (bs // nt, nt), 0, NUM_CLASSES - 1,
                               dtype=jnp.int32)

    params = init_params(k_p, in_features, MODEL_DIM)

    out = seq_trans_forward(params, seq_x, seq_y, bs, nt)
    out = jax.block_until_ready(out)

    assert out.shape == (bs // nt, MODEL_DIM), out.shape
    assert bool(jnp.all(jnp.isfinite(out)))
    print("KERNEL_OK")
</pallas_src>

<mosaic_0001>
module attributes {stable_mosaic.version = 11 : i64} {
  func.func @_fused_seqtrans_kernel(%arg0: i32, %arg1: memref<1x4x768xf32, #tpu.memory_space<vmem>>, %arg2: memref<768x128xbf16, #tpu.memory_space<vmem>>, %arg3: memref<1x128xf32, #tpu.memory_space<vmem>>, %arg4: memref<8x4xf32, #tpu.memory_space<vmem>>, %arg5: memref<1x8x128xf32, #tpu.memory_space<vmem>>, %arg6: memref<128x384xbf16, #tpu.memory_space<vmem>>, %arg7: memref<128x128xbf16, #tpu.memory_space<vmem>>, %arg8: memref<128x256xbf16, #tpu.memory_space<vmem>>, %arg9: memref<1x256xf32, #tpu.memory_space<vmem>>, %arg10: memref<256x128xbf16, #tpu.memory_space<vmem>>, %arg11: memref<1x128xf32, #tpu.memory_space<vmem>>, %arg12: memref<1x1x128xf32, #tpu.memory_space<vmem>>) attributes {dimension_semantics = [#tpu.dimension_semantics<parallel>], iteration_bounds = array<i64: 2>, scalar_prefetch = 0 : i64, scratch_operands = 0 : i64, tpu.core_type = #tpu.core_type<tc>, window_params = [{transform_indices = @transform_0, window_bounds = array<i64: 1, 4, 768>}, {pipeline_mode = #tpu.pipeline_mode<synchronous>, transform_indices = @transform_1, window_bounds = array<i64: 768, 128>}, {pipeline_mode = #tpu.pipeline_mode<synchronous>, transform_indices = @transform_2, window_bounds = array<i64: 1, 128>}, {pipeline_mode = #tpu.pipeline_mode<synchronous>, transform_indices = @transform_3, window_bounds = array<i64: 8, 4>}, {transform_indices = @transform_4, window_bounds = array<i64: 1, 8, 128>}, {pipeline_mode = #tpu.pipeline_mode<synchronous>, transform_indices = @transform_5, window_bounds = array<i64: 128, 384>}, {pipeline_mode = #tpu.pipeline_mode<synchronous>, transform_indices = @transform_6, window_bounds = array<i64: 128, 128>}, {pipeline_mode = #tpu.pipeline_mode<synchronous>, transform_indices = @transform_7, window_bounds = array<i64: 128, 256>}, {pipeline_mode = #tpu.pipeline_mode<synchronous>, transform_indices = @transform_8, window_bounds = array<i64: 1, 256>}, {pipeline_mode = #tpu.pipeline_mode<synchronous>, transform_indices = @transform_9, window_bounds = array<i64: 256, 128>}, {pipeline_mode = #tpu.pipeline_mode<synchronous>, transform_indices = @transform_10, window_bounds = array<i64: 1, 128>}, {transform_indices = @transform_11, window_bounds = array<i64: 1, 1, 128>}]} {
    %c0 = arith.constant 0 : index
    %c0_0 = arith.constant 0 : index
    %c0_1 = arith.constant 0 : index
    %0 = vector.load %arg1[%c0, %c0_0, %c0_1] : memref<1x4x768xf32, #tpu.memory_space<vmem>>, vector<1x4x768xf32>
    %1 = vector.shape_cast %0 : vector<1x4x768xf32> to vector<4x768xf32>
    %2 = arith.truncf %1 : vector<4x768xf32> to vector<4x768xbf16>
    %c0_2 = arith.constant 0 : index
    %c0_3 = arith.constant 0 : index
    %3 = vector.load %arg2[%c0_2, %c0_3] : memref<768x128xbf16, #tpu.memory_space<vmem>>, vector<768x128xbf16>
    %cst = arith.constant dense<0.000000e+00> : vector<4x128xf32>
    %4 = tpu.matmul %2, %3, %cst {dimension_numbers = #tpu.dot_dimension_numbers<[1], [0], [0], [1], [0, 0, 1, 1], [], []>} : vector<4x768xbf16>, vector<768x128xbf16>, vector<4x128xf32> -> vector<4x128xf32>
    %c0_4 = arith.constant 0 : index
    %c0_5 = arith.constant 0 : index
    %5 = vector.load %arg3[%c0_4, %c0_5] : memref<1x128xf32, #tpu.memory_space<vmem>>, vector<1x128xf32>
    %6 = vector.broadcast %5 : vector<1x128xf32> to vector<4x128xf32>
    %7 = arith.addf %4, %6 : vector<4x128xf32>
    %c0_6 = arith.constant 0 : index
    %c0_7 = arith.constant 0 : index
    %8 = vector.load %arg4[%c0_6, %c0_7] : memref<8x4xf32, #tpu.memory_space<vmem>>, vector<8x4xf32>
    %cst_8 = arith.constant dense<0.000000e+00> : vector<8x128xf32>
    %9 = tpu.matmul %8, %7, %cst_8 {dimension_numbers = #tpu.dot_dimension_numbers<[1], [0], [0], [1], [0, 0, 1, 1], [], []>} : vector<8x4xf32>, vector<4x128xf32>, vector<8x128xf32> -> vector<8x128xf32>
    %c0_9 = arith.constant 0 : index
    %c0_10 = arith.constant 0 : index
    %c0_11 = arith.constant 0 : index
    %10 = vector.load %arg5[%c0_9, %c0_10, %c0_11] : memref<1x8x128xf32, #tpu.memory_space<vmem>>, vector<1x8x128xf32>
    %11 = vector.shape_cast %10 : vector<1x8x128xf32> to vector<8x128xf32>
    %12 = arith.addf %9, %11 : vector<8x128xf32>
    %13 = arith.truncf %12 : vector<8x128xf32> to vector<8x128xbf16>
    %c0_12 = arith.constant 0 : index
    %c0_13 = arith.constant 0 : index
    %14 = vector.load %arg6[%c0_12, %c0_13] : memref<128x384xbf16, #tpu.memory_space<vmem>>, vector<128x384xbf16>
    %cst_14 = arith.constant dense<0.000000e+00> : vector<8x384xf32>
    %15 = tpu.matmul %13, %14, %cst_14 {dimension_numbers = #tpu.dot_dimension_numbers<[1], [0], [0], [1], [0, 0, 1, 1], [], []>} : vector<8x128xbf16>, vector<128x384xbf16>, vector<8x384xf32> -> vector<8x384xf32>
    %16 = vector.extract_strided_slice %15 {offsets = [0, 0], sizes = [8, 128], strides = [1, 1]} : vector<8x384xf32> to vector<8x128xf32>
    %cst_15 = arith.constant 0.0883883461 : f32
    %17 = vector.broadcast %cst_15 : f32 to vector<8x128xf32>
    %18 = arith.mulf %16, %17 : vector<8x128xf32>
    %19 = vector.extract_strided_slice %15 {offsets = [0, 128], sizes = [8, 128], strides = [1, 1]} : vector<8x384xf32> to vector<8x128xf32>
    %20 = vector.extract_strided_slice %15 {offsets = [0, 256], sizes = [8, 128], strides = [1, 1]} : vector<8x384xf32> to vector<8x128xf32>
    %cst_16 = arith.constant dense<0.000000e+00> : vector<8x8xf32>
    %21 = tpu.matmul %18, %19, %cst_16 {dimension_numbers = #tpu.dot_dimension_numbers<[1], [1], [0], [0], [0, 0, 1, 0], [], []>} : vector<8x128xf32>, vector<8x128xf32>, vector<8x8xf32> -> vector<8x8xf32>
    %cst_17 = arith.constant dense<0xFF800000> : vector<8xf32>
    %22 = vector.multi_reduction <maximumf>, %21, %cst_17 [1] : vector<8x8xf32> to vector<8xf32>
    %23 = vector.shape_cast %22 : vector<8xf32> to vector<8x1xf32>
    %24 = vector.broadcast %23 : vector<8x1xf32> to vector<8x8xf32>
    %25 = arith.subf %21, %24 : vector<8x8xf32>
    %26 = math.exp %25 : vector<8x8xf32>
    %cst_18 = arith.constant dense<0.000000e+00> : vector<8xf32>
    %27 = vector.multi_reduction <add>, %26, %cst_18 [1] : vector<8x8xf32> to vector<8xf32>
    %28 = vector.shape_cast %27 : vector<8xf32> to vector<8x1xf32>
    %29 = tpu.reciprocal %28 {approx = true} : vector<8x1xf32> -> vector<8x1xf32>
    %30 = vector.broadcast %29 : vector<8x1xf32> to vector<8x8xf32>
    %31 = arith.mulf %26, %30 : vector<8x8xf32>
    %cst_19 = arith.constant dense<0.000000e+00> : vector<8x128xf32>
    %32 = tpu.matmul %31, %20, %cst_19 {dimension_numbers = #tpu.dot_dimension_numbers<[1], [0], [0], [1], [0, 0, 1, 1], [], []>} : vector<8x8xf32>, vector<8x128xf32>, vector<8x128xf32> -> vector<8x128xf32>
    %33 = arith.truncf %32 : vector<8x128xf32> to vector<8x128xbf16>
    %c0_20 = arith.constant 0 : index
    %c0_21 = arith.constant 0 : index
    %34 = vector.load %arg7[%c0_20, %c0_21] : memref<128x128xbf16, #tpu.memory_space<vmem>>, vector<128x128xbf16>
    %cst_22 = arith.constant dense<0.000000e+00> : vector<8x128xf32>
    %35 = tpu.matmul %33, %34, %cst_22 {dimension_numbers = #tpu.dot_dimension_numbers<[1], [0], [0], [1], [0, 0, 1, 1], [], []>} : vector<8x128xbf16>, vector<128x128xbf16>, vector<8x128xf32> -> vector<8x128xf32>
    %36 = arith.addf %12, %35 : vector<8x128xf32>
    %37 = arith.truncf %36 : vector<8x128xf32> to vector<8x128xbf16>
    %c0_23 = arith.constant 0 : index
    %c0_24 = arith.constant 0 : index
    %38 = vector.load %arg8[%c0_23, %c0_24] : memref<128x256xbf16, #tpu.memory_space<vmem>>, vector<128x256xbf16>
    %cst_25 = arith.constant dense<0.000000e+00> : vector<8x256xf32>
    %39 = tpu.matmul %37, %38, %cst_25 {dimension_numbers = #tpu.dot_dimension_numbers<[1], [0], [0], [1], [0, 0, 1, 1], [], []>} : vector<8x128xbf16>, vector<128x256xbf16>, vector<8x256xf32> -> vector<8x256xf32>
    %c0_26 = arith.constant 0 : index
    %c0_27 = arith.constant 0 : index
    %40 = vector.load %arg9[%c0_26, %c0_27] : memref<1x256xf32, #tpu.memory_space<vmem>>, vector<1x256xf32>
    %41 = vector.broadcast %40 : vector<1x256xf32> to vector<8x256xf32>
    %42 = arith.addf %39, %41 : vector<8x256xf32>
    %cst_28 = arith.constant 0.000000e+00 : f32
    %43 = vector.broadcast %cst_28 : f32 to vector<8x256xf32>
    %44 = arith.maximumf %42, %43 : vector<8x256xf32>
    %45 = arith.truncf %44 : vector<8x256xf32> to vector<8x256xbf16>
    %c0_29 = arith.constant 0 : index
    %c0_30 = arith.constant 0 : index
    %46 = vector.load %arg10[%c0_29, %c0_30] : memref<256x128xbf16, #tpu.memory_space<vmem>>, vector<256x128xbf16>
    %cst_31 = arith.constant dense<0.000000e+00> : vector<8x128xf32>
    %47 = tpu.matmul %45, %46, %cst_31 {dimension_numbers = #tpu.dot_dimension_numbers<[1], [0], [0], [1], [0, 0, 1, 1], [], []>} : vector<8x256xbf16>, vector<256x128xbf16>, vector<8x128xf32> -> vector<8x128xf32>
    %c0_32 = arith.constant 0 : index
    %c0_33 = arith.constant 0 : index
    %48 = vector.load %arg11[%c0_32, %c0_33] : memref<1x128xf32, #tpu.memory_space<vmem>>, vector<1x128xf32>
    %49 = vector.broadcast %48 : vector<1x128xf32> to vector<8x128xf32>
    %50 = arith.addf %47, %49 : vector<8x128xf32>
    %51 = arith.addf %36, %50 : vector<8x128xf32>
    %52 = vector.extract_strided_slice %51 {offsets = [7, 0], sizes = [1, 128], strides = [1, 1]} : vector<8x128xf32> to vector<1x128xf32>
    %c0_34 = arith.constant 0 : index
    %c0_35 = arith.constant 0 : index
    %c0_36 = arith.constant 0 : index
    %53 = vector.load %arg12[%c0_34, %c0_35, %c0_36] : memref<1x1x128xf32, #tpu.memory_space<vmem>>, vector<1x1x128xf32>
    %54 = vector.shape_cast %53 : vector<1x1x128xf32> to vector<1x128xf32>
    %55 = vector.shape_cast %52 : vector<1x128xf32> to vector<1x1x128xf32>
    tpu.vector_store %arg12[%c0_34, %c0_35, %c0_36], %55 {strides = array<i32>} : memref<1x1x128xf32, #tpu.memory_space<vmem>>, vector<1x1x128xf32>,
    return
  }
  func.func @transform_0(%arg0: i32) -> (i32, i32, i32) {
    %c0_i32 = arith.constant 0 : i32
    %c0_i32_0 = arith.constant 0 : i32
    %c0_i32_1 = arith.constant 0 : i32
    return %arg0, %c0_i32, %c0_i32_0 : i32, i32, i32
  }
  func.func @transform_1(%arg0: i32) -> (i32, i32) {
    %c0_i32 = arith.constant 0 : i32
    %c0_i32_0 = arith.constant 0 : i32
    %c0_i32_1 = arith.constant 0 : i32
    return %c0_i32, %c0_i32_0 : i32, i32
  }
  func.func @transform_2(%arg0: i32) -> (i32, i32) {
    %c0_i32 = arith.constant 0 : i32
    %c0_i32_0 = arith.constant 0 : i32
    %c0_i32_1 = arith.constant 0 : i32
    return %c0_i32, %c0_i32_0 : i32, i32
  }
  func.func @transform_3(%arg0: i32) -> (i32, i32) {
    %c0_i32 = arith.constant 0 : i32
    %c0_i32_0 = arith.constant 0 : i32
    %c0_i32_1 = arith.constant 0 : i32
    return %c0_i32, %c0_i32_0 : i32, i32
  }
  func.func @transform_4(%arg0: i32) -> (i32, i32, i32) {
    %c0_i32 = arith.constant 0 : i32
    %c0_i32_0 = arith.constant 0 : i32
    %c0_i32_1 = arith.constant 0 : i32
    return %arg0, %c0_i32, %c0_i32_0 : i32, i32, i32
  }
  func.func @transform_5(%arg0: i32) -> (i32, i32) {
    %c0_i32 = arith.constant 0 : i32
    %c0_i32_0 = arith.constant 0 : i32
    %c0_i32_1 = arith.constant 0 : i32
    return %c0_i32, %c0_i32_0 : i32, i32
  }
  func.func @transform_6(%arg0: i32) -> (i32, i32) {
    %c0_i32 = arith.constant 0 : i32
    %c0_i32_0 = arith.constant 0 : i32
    %c0_i32_1 = arith.constant 0 : i32
    return %c0_i32, %c0_i32_0 : i32, i32
  }
  func.func @transform_7(%arg0: i32) -> (i32, i32) {
    %c0_i32 = arith.constant 0 : i32
    %c0_i32_0 = arith.constant 0 : i32
    %c0_i32_1 = arith.constant 0 : i32
    return %c0_i32, %c0_i32_0 : i32, i32
  }
  func.func @transform_8(%arg0: i32) -> (i32, i32) {
    %c0_i32 = arith.constant 0 : i32
    %c0_i32_0 = arith.constant 0 : i32
    %c0_i32_1 = arith.constant 0 : i32
    return %c0_i32, %c0_i32_0 : i32, i32
  }
  func.func @transform_9(%arg0: i32) -> (i32, i32) {
    %c0_i32 = arith.constant 0 : i32
    %c0_i32_0 = arith.constant 0 : i32
    %c0_i32_1 = arith.constant 0 : i32
    return %c0_i32, %c0_i32_0 : i32, i32
  }
  func.func @transform_10(%arg0: i32) -> (i32, i32) {
    %c0_i32 = arith.constant 0 : i32
    %c0_i32_0 = arith.constant 0 : i32
    %c0_i32_1 = arith.constant 0 : i32
    return %c0_i32, %c0_i32_0 : i32, i32
  }
  func.func @transform_11(%arg0: i32) -> (i32, i32, i32) {
    %c0_i32 = arith.constant 0 : i32
    %c0_i32_0 = arith.constant 0 : i32
    %c0_i32_1 = arith.constant 0 : i32
    return %arg0, %c0_i32, %c0_i32_0 : i32, i32, i32
  }
}

</mosaic_0001>

<bundles_post_ra>
// kernel: seq_trans_forward.1
= control target key start
LH: loop header
LB: loop body
LE: loop exit
PB: predicated region body
PF: predicated region fallthrough
CT: control target
= control target key end

     0   :  { %16 = vsyncpa [#allocation3], 0  ;;  %s3022_s0 = inlined_call_operand.vmem [shape: f32[2,4,768], index: 0, kind: input, shape index: {}]   ;;  %s3023_s1 = inlined_call_operand.vmem [shape: bf16[768,128], index: 1, kind: input, shape index: {}]   ;;  %s3024_s2 = inlined_call_operand.vmem [shape: f32[1,128], index: 2, kind: input, shape index: {}]   ;;  %s3025_s3 = inlined_call_operand.vmem [shape: f32[8,4], index: 3, kind: input, shape index: {}]   ;;  %s3026_s4 = inlined_call_operand.vmem [shape: f32[2,8,128], index: 4, kind: input, shape index: {}]   ;;  %s3027_s5 = inlined_call_operand.vmem [shape: bf16[128,384], index: 5, kind: input, shape index: {}]   ;;  %s3028_s6 = inlined_call_operand.vmem [shape: bf16[128,128], index: 6, kind: input, shape index: {}]   ;;  %s3029_s7 = inlined_call_operand.vmem [shape: bf16[128,256], index: 7, kind: input, shape index: {}]   ;;  %s3030_s8 = inlined_call_operand.vmem [shape: f32[1,256], index: 8, kind: input, shape index: {}]   ;;  %s3031_s9 = inlined_call_operand.vmem [shape: bf16[256,128], index: 9, kind: input, shape index: {}]   ;;  %s3032_s10 = inlined_call_operand.vmem [shape: f32[1,128], index: 10, kind: input, shape index: {}]   ;;  %s3033_s11 = inlined_call_operand.hbm [shape: f32[2,1,128], index: 11, kind: output, shape index: {}]  }
   0x1   :  { %18 = vsyncpa [#allocation3 + $0x1], 0  ;;  %s2525_s17 = smov 0   ;;  %s2527_s18 = smov 0  }
   0x2   :  { %s2529_s19 = smov 0   ;;  %s2531_s20 = smov 0  }
   0x3 LB: > { %3035 = sst [smem:[#allocation5_spill]] %s2455_s19  ;;  %s2546_s21 = sadd.s32 4294967295, %s2459_s20   ;;  %s2459_s20 = sphi %s2531_s20, %s3044_s20   ;;  %s2455_s19 = sphi %s2529_s19, %s3043_s19   ;;  %s2451_s18 = sphi %s2527_s18, %s3042_s18   ;;  %s2447_s17 = sphi %s2525_s17, %s3041_s17  }
   0x4   : > { %s1926_s22 = sadd.s32 4294967294, %s2459_s20   ;;  %s2550_s23 = sadd.s32 1, %s2459_s20  }
   0x5   : > { %s272_s24 = sadd.s32 1, %s2455_s19  ;;  %s269_s25 = ssub.s32 %s2459_s20, %s2550_s23 }
   0x6   : > { %p282_p0 = scmp.ne.s32.totalorder %s2455_s19, %s2451_s18  ;;  %p270_p1 = scmp.eq.s32.totalorder %s269_s25, 0 }
   0x7   : > { %p283_p2 = scmp.eq.s32.totalorder %s2546_s21, 1  ;;  %p288_p3 = scmp.ne.s32.totalorder %s2451_s18, %s2447_s17 }
   0x8   : > { %p289_p4 = scmp.eq.s32.totalorder %s1926_s22, 1  ;;  %p1929_p7 = scmp.ge.s32.totalorder %s2459_s20, 1 }
   0x9   : > { %s2561_s26 = scalar_select %p270_p1, %s2455_s19, %s272_s24  }
   0xa   : > { %p2563_p5 = por %p283_p2, %p282_p0  ;;  %p2567_p6 = por %p289_p4, %p288_p3 }
   0xb   : > { %3036 = sst [smem:[#allocation6_spill]] %s2561_s26  ;;  %p349_p8 = scmp.lt.s32.totalorder %s2459_s20, 3 }
   0xd   : > { %p350_p9 = pnand %p1929_p7, %p349_p8 }
   0xe   : > { %v2262_v0 = vld [vmem:[%s3023_s1 + $0x40] sm:$0xff] (!%p350_p9)   ;;  %v2266_v4 = vld [vmem:[%s3023_s1 + $0x48] sm:$0xff] (!%p350_p9)   ;;  %v2270_v8 = vld [vmem:[%s3023_s1 + $0x50] sm:$0xff] (!%p350_p9)   ;;  %p392_p10 = scmp.lt.s32.totalorder (!%p350_p9), %s2546_s21, 1  ;;  %v2461_v60 = vmov (!%p350_p9), 0.0   ;;  %vm2462_vm0 = vmmov (!%p350_p9), 0  }
   0xf   : > { %353 = sbr.rel (%p350_p9) target bundleno = 2138 (0x85a), region = 64  ;;  %v2263_v1 = vld [vmem:[%s3023_s1] sm:$0xff] (!%p350_p9)   ;;  %2052 = vmatprep.subr.bf16.mxu0 (!%p350_p9), %v2262_v0  ;;  %v2267_v5 = vld [vmem:[%s3023_s1 + $0x8] sm:$0xff] (!%p350_p9)   ;;  %v2271_v9 = vld [vmem:[%s3023_s1 + $0x10] sm:$0xff] (!%p350_p9)   ;;  %vm937_vm1 = vcmask (!%p350_p9), 1043456   ;;  %vm933_vm2 = vcmask (!%p350_p9), 31744  }
  0x10   : > { %v2264_v2 = vld [vmem:[%s3023_s1 + $0xc0] sm:$0xff] (!%p350_p9)   ;;  %2053 = vmatpush3.bf16.msra.mxu0 (!%p350_p9), %v2263_v1  ;;  %v2268_v6 = vld [vmem:[%s3023_s1 + $0xc8] sm:$0xff] (!%p350_p9)   ;;  %v2272_v10 = vld [vmem:[%s3023_s1 + $0xd0] sm:$0xff] (!%p350_p9)   ;;  %vm1324_vm3 = vcmask (!%p350_p9), 64512   ;;  %s2049_s25 = sshll.u32 (!%p350_p9), %s2546_s21, 4 }
  0x11   : > { %v2265_v3 = vld [vmem:[%s3023_s1 + $0x80] sm:$0xff] (!%p350_p9)   ;;  %2074 = vmatprep.subr.bf16.mxu1 (!%p350_p9), %v2264_v2  ;;  %2054 = vmatprep.subr.bf16.mxu0 (!%p350_p9), %v2266_v4  ;;  %v2269_v7 = vld [vmem:[%s3023_s1 + $0x88] sm:$0xff] (!%p350_p9)   ;;  %v2273_v11 = vld [vmem:[%s3023_s1 + $0x90] sm:$0xff] (!%p350_p9)   ;;  %s2980_s15 = scalar_lea.hbm (!%p350_p9), %s3033_s11, %s2049_s25 }
  0x12   : > { %2075 = vmatpush3.bf16.msra.mxu1 (!%p350_p9), %v2265_v3  ;;  %v2274_v12 = vld [vmem:[%s3023_s1 + $0x58] sm:$0xff] (!%p350_p9)   ;;  %v2278_v16 = vld [vmem:[%s3023_s1 + $0x60] sm:$0xff] (!%p350_p9)   ;;  %v2282_v20 = vld [vmem:[%s3023_s1 + $0x68] sm:$0xff] (!%p350_p9)  }
  0x13   : > { %2076 = vmatprep.subr.bf16.mxu1 (!%p350_p9), %v2268_v6  ;;  %v2275_v13 = vld [vmem:[%s3023_s1 + $0x18] sm:$0xff] (!%p350_p9)   ;;  %v2279_v17 = vld [vmem:[%s3023_s1 + $0x20] sm:$0xff] (!%p350_p9)   ;;  %v2283_v21 = vld [vmem:[%s3023_s1 + $0x28] sm:$0xff] (!%p350_p9)  }
  0x14   : > { %2055 = vmatpush3.bf16.msra.mxu0 (!%p350_p9), %v2267_v5  ;;  %v2276_v14 = vld [vmem:[%s3023_s1 + $0xd8] sm:$0xff] (!%p350_p9)   ;;  %v2280_v18 = vld [vmem:[%s3023_s1 + $0xe0] sm:$0xff] (!%p350_p9)   ;;  %v2284_v22 = vld [vmem:[%s3023_s1 + $0xe8] sm:$0xff] (!%p350_p9)  }
  0x15   : > { %2056 = vmatprep.subr.bf16.mxu0 (!%p350_p9), %v2270_v8  ;;  %v2277_v15 = vld [vmem:[%s3023_s1 + $0x98] sm:$0xff] (!%p350_p9)   ;;  %v2281_v19 = vld [vmem:[%s3023_s1 + $0xa0] sm:$0xff] (!%p350_p9)   ;;  %v2285_v23 = vld [vmem:[%s3023_s1 + $0xa8] sm:$0xff] (!%p350_p9)  }
  0x16   : > { %2077 = vmatpush3.bf16.msra.mxu1 %v2269_v7  ;;  %s2638_s12 = scalar_select %p392_p10, %s2546_s21, 1  ;;  %v2286_v24 = vld [vmem:[%s3023_s1 + $0x70] sm:$0xff]   ;;  %v2290_v28 = vld [vmem:[%s3023_s1 + $0x78] sm:$0xff]   ;;  %v2295_v35 = vld [vmem:[%s3023_s1 + $0x140] sm:$0xff]  }
  0x17   : > { %2078 = vmatprep.subr.bf16.mxu1 %v2272_v10  ;;  %v2287_v25 = vld [vmem:[%s3023_s1 + $0x30] sm:$0xff]   ;;  %v2291_v29 = vld [vmem:[%s3023_s1 + $0x38] sm:$0xff]   ;;  %v2297_v39 = vld [vmem:[%s3023_s1 + $0x100] sm:$0xff]   ;;  %s2464_s21 = smov [#allocation2]  }
  0x18   : > { %2057 = vmatpush3.bf16.msra.mxu0 %v2271_v9  ;;  %s2219_s30 = smul.u32 24, %s2638_s12  ;;  %v2288_v26 = vld [vmem:[%s3023_s1 + $0xf0] sm:$0xff]   ;;  %v2292_v30 = vld [vmem:[%s3023_s1 + $0xf8] sm:$0xff]   ;;  %v2298_v41 = vld [vmem:[%s3023_s1 + $0x148] sm:$0xff]   ;;  %s1931_s22 = sshll.u32 %s2638_s12, 3 }
  0x19   : > { %2058 = vmatprep.subr.bf16.mxu0 %v2274_v12  ;;  %v2289_v27 = vld [vmem:[%s3023_s1 + $0xb0] sm:$0xff]   ;;  %v2294_v33 = vld [vmem:[%s3023_s1 + $0xb8] sm:$0xff]   ;;  %v2299_v43 = vld [vmem:[%s3023_s1 + $0x108] sm:$0xff]   ;;  %s400_s24 = scalar_lea.vmem %s3026_s4, %s1931_s22  ;;  %s2401_s19 = sshll.u32 %s2464_s21, 4  ;;  %s2402_s19 = int_to_ptr.vmem [resolvable:$false] %s2401_s19 }
  0x1a   : > { %2079 = vmatpush3.bf16.msra.mxu1 %v2273_v11  ;;  %s2668_s26 = scalar_lea.vmem %s3022_s0, %s2219_s30  ;;  %v2300_v44 = vld [vmem:[%s3023_s1 + $0x150] sm:$0xff]   ;;  %v2302_v46 = vld [vmem:[%s3023_s1 + $0x158] sm:$0xff]   ;;  %v2304_v48 = vld [vmem:[%s3023_s1 + $0x160] sm:$0xff]   ;;  %s390_s30 = sand.u32 1, %s2451_s18  }
  0x1b   : > { %2080 = vmatprep.subr.bf16.mxu1 %v2276_v14  ;;  %v402_v31 = vld [vmem:[%s2668_s26] sm:$0xff]  ;;  %v403_v36 = vld [vmem:[%s2668_s26 + $0x8] sm:$0xff]  ;;  %v2301_v45 = vld [vmem:[%s3023_s1 + $0x110] sm:$0xff]   ;;  %s391_s29 = scalar_lea.vmem [#allocation2], %s390_s30  ;;  %s1847_s16 = scalar_lea.sflag [#allocation3], %s390_s30 }
  0x1c   : > { %2059 = vmatpush3.bf16.msra.mxu0 %v2275_v13  ;;  %v408_v32 = vcombine.high %v402_v31, %v402_v31  ;;  %v414_v34 = vpack.c.bf16 %v402_v31, %v402_v31  ;;  %v409_v38 = vcombine.high %v403_v36, %v403_v36  ;;  %v416_v40 = vpack.c.bf16 %v403_v36, %v403_v36  ;;  %v2303_v47 = vld [vmem:[%s3023_s1 + $0x118] sm:$0xff]   ;;  %v2305_v49 = vld [vmem:[%s3023_s1 + $0x120] sm:$0xff]   ;;  %v404_v50 = vld [vmem:[%s2668_s26 + $0x10] sm:$0xff]  ;;  %s1859_s13 = sshll.u32 %s391_s29, 4  ;;  %s2982_s13 = int_to_ptr.vmem [resolvable:$true] %s1859_s13 }
  0x1d   : > { %2060 = vmatprep.subr.bf16.mxu0 %v2278_v16  ;;  %v2306_v51 = vld [vmem:[%s3023_s1 + $0x168] sm:$0xff]   ;;  %v410_v52 = vcombine.high %v404_v50, %v404_v50  ;;  %v2308_v55 = vld [vmem:[%s3023_s1 + $0x170] sm:$0xff]   ;;  %v2310_v57 = vld [vmem:[%s3023_s1 + $0x178] sm:$0xff]   ;;  %v418_v59 = vpack.c.bf16 %v404_v50, %v404_v50  ;;  %s2397_s22 = scalar_lea.vmem %s2982_s13, 16  ;;  %p2404_p0 = scmp.lt.s32.totalorder %s2982_s13, %s2402_s19 }
  0x1e   : > { %2081 = vmatpush3.bf16.msra.mxu1 %v2277_v15  ;;  %v415_v37 = vpack.c.bf16 %v408_v32, %v408_v32  ;;  %v417_v42 = vpack.c.bf16 %v409_v38, %v409_v38  ;;  %v2307_v54 = vld [vmem:[%s3023_s1 + $0x128] sm:$0xff]   ;;  %v2309_v56 = vld [vmem:[%s3023_s1 + $0x130] sm:$0xff]   ;;  %v2311_v58 = vld [vmem:[%s3023_s1 + $0x138] sm:$0xff]   ;;  %p2398_p11 = scmp.ne.s32.totalorder %s2982_s13, %s2397_s22 }
  0x1f   : > { %2082 = vmatprep.subr.bf16.mxu1 %v2280_v18  ;;  %v419_v53 = vpack.c.bf16 %v410_v52, %v410_v52  ;;  %v2313_v61 = vld [vmem:[%s3027_s5] ss:$12 sps:$4 sm:$0xff]   ;;  %v2315_v62 = vld [vmem:[%s3027_s5 + $0x4] ss:$12 sps:$4 sm:$0xff]   ;;  %v2319_v63 = vld [vmem:[%s3027_s5 + $0x1c] ss:$12 sps:$4 sm:$0xff]  }
  0x20   : > { %2061 = vmatpush3.bf16.msra.mxu0 %v2279_v17  ;;  %843 = vmatprep.mubr.bf16.mxu0 %v415_v37  ;;  %v2317_v0 = vld [vmem:[%s3027_s5 + $0x18] ss:$12 sps:$4 sm:$0xff]   ;;  %v2323_v1 = vld [vmem:[%s3027_s5 + $0x34] ss:$12 sps:$4 sm:$0xff]   ;;  %v2321_v2 = vld [vmem:[%s3027_s5 + $0x30] ss:$12 sps:$4 sm:$0xff]   ;;  %p2399_p12 = pnand %p2398_p11, %p2563_p5 }
  0x21   : > { %2062 = vmatprep.subr.bf16.mxu0 %v2282_v20  ;;  %883 = vmatprep.mubr.bf16.mxu1 %v417_v42  ;;  %v2327_v3 = vld [vmem:[%s3027_s5 + $0x4c] ss:$12 sps:$4 sm:$0xff]   ;;  %v2325_v4 = vld [vmem:[%s3027_s5 + $0x48] ss:$12 sps:$4 sm:$0xff]   ;;  %v2331_v5 = vld [vmem:[%s3027_s5 + $0x64] ss:$12 sps:$4 sm:$0xff]  }
  0x22   : > { %2083 = vmatpush3.bf16.msra.mxu1 %v2281_v19  ;;  %v2329_v6 = vld [vmem:[%s3027_s5 + $0x60] ss:$12 sps:$4 sm:$0xff]   ;;  %v2335_v7 = vld [vmem:[%s3027_s5 + $0x7c] ss:$12 sps:$4 sm:$0xff]   ;;  %v2333_v8 = vld [vmem:[%s3027_s5 + $0x78] ss:$12 sps:$4 sm:$0xff]   ;;  %p2400_p13 = pneg %p2399_p12 }
  0x23   : > { %2084 = vmatprep.subr.bf16.mxu1 %v2284_v22  ;;  %v2339_v9 = vld [vmem:[%s3027_s5 + $0x94] ss:$12 sps:$4 sm:$0xff]   ;;  %v2337_v10 = vld [vmem:[%s3027_s5 + $0x90] ss:$12 sps:$4 sm:$0xff]   ;;  %v2340_v37 = vld [vmem:[%s3027_s5 + $0x98] ss:$12 sps:$4 sm:$0xff]  }
  0x24   : > { %2063 = vmatpush3.bf16.msra.mxu0 %v2283_v21  ;;  %v1932_v12 = vld [vmem:[%s3024_s2] ss:$0 sm:$0xff]  ;;  %v2316_v31 = vld [vmem:[%s3027_s5 + $0x8] ss:$12 sps:$4 sm:$0xff]   ;;  %v2343_v38 = vld [vmem:[%s3027_s5 + $0xac] ss:$12 sps:$4 sm:$0xff]  }
  0x25   : > { %2064 = vmatprep.subr.bf16.mxu0 %v2286_v24  ;;  %v2320_v32 = vld [vmem:[%s3027_s5 + $0x20] ss:$12 sps:$4 sm:$0xff]  }
  0x26   : > { %2085 = vmatpush3.bf16.msra.mxu1 %v2285_v23  ;;  %v2336_v36 = vld [vmem:[%s3027_s5 + $0x80] ss:$12 sps:$4 sm:$0xff]  }
  0x27   : > { %2086 = vmatprep.subr.bf16.mxu1 %v2288_v26  ;;  %v932_v42 = vld [vmem:[%s400_s24] sm:$0xff]  ;;  %s2403_s24 = scalar_lea.vmem %s2402_s19, 32 }
  0x28   : > { %2065 = vmatpush3.bf16.msra.mxu0 %v2287_v25  ;;  %p2405_p1 = scmp.lt.s32.totalorder %s2403_s24, %s2397_s22 }
  0x29   : > { %2066 = vmatprep.subr.bf16.mxu0 %v2290_v28 }
  0x2a   : > { %2087 = vmatpush3.bf16.msra.mxu1 %v2289_v27  ;;  %p2406_p2 = por %p2405_p1, %p2404_p0 }
  0x2b   : > { %2088 = vmatprep.subr.bf16.mxu1 %v2292_v30  ;;  %v931_v30 = vld [vmem:[%s3025_s3] sm:$0xff] }
  0x2c   : > { %2067 = vmatpush3.bf16.msra.mxu0 %v2291_v29  ;;  %p2407_p3 = pnand %p2406_p2, %p2400_p13 }
  0x2d   : > { %2096 = vmatprep.subr.bf16.mxu0 %v2295_v35  ;;  %v2332_v35 = vld [vmem:[%s3027_s5 + $0x68] ss:$12 sps:$4 sm:$0xff]  }
  0x2e   : > { %2089 = vmatpush3.bf16.msra.mxu1 %v2294_v33  ;;  %v2324_v33 = vld [vmem:[%s3027_s5 + $0x38] ss:$12 sps:$4 sm:$0xff]  }
  0x2f   : > { %844 = vmatmul.mubr.bf16.vlgmr.msra.gmra.mrb[0].mxu0 %v414_v34  ;;  %1172 = vmatprep.subr.bf16.mxu1 %v2315_v62  ;;  %v2328_v34 = vld [vmem:[%s3027_s5 + $0x50] ss:$12 sps:$4 sm:$0xff]  }
  0x30   : > { %2097 = vmatpush3.bf16.msra.mxu0 %v2297_v39  ;;  %923 = vmatprep.mubr.bf16.mxu0 %v419_v53  ;;  %v2341_v39 = vld [vmem:[%s3027_s5 + $0xa8] ss:$12 sps:$4 sm:$0xff]  }
  0x31   : > { %884 = vmatmul.mubr.bf16.vlgmr.msra.gmra.mrb[0].mxu1 %v416_v40  ;;  %2098 = vmatprep.subr.bf16.mxu0 %v2298_v41  ;;  %v2344_v40 = vld [vmem:[%s3027_s5 + $0xb0] ss:$12 sps:$4 sm:$0xff]   ;;  %v2463_v41 = vmov 0  }
  0x32   : > { %1173 = vmatpush1.bf16.msra.mxu1 %v2313_v61  ;;  %1204 = vmatprep.mubr.bf16.mxu1 %v2463_v41 }
  0x33   : > { %1174 = vmatprep.subr.bf16.mxu1 %v2319_v63 }
  0x34   : > { %2099 = vmatpush3.bf16.msra.mxu0 %v2299_v43 }
  0x35   : > { %2100 = vmatprep.subr.bf16.mxu0 %v2300_v44 }
  0x36   : > { %1175 = vmatpush1.bf16.msra.mxu1 %v2317_v0 }
  0x37   : > { %1176 = vmatprep.subr.bf16.mxu1 %v2323_v1 }
  0x38   : > { %2101 = vmatpush3.bf16.msra.mxu0 %v2301_v45 }
  0x39   : > { %2102 = vmatprep.subr.bf16.mxu0 %v2302_v46 }
  0x3a   : > { %1177 = vmatpush1.bf16.msra.mxu1 %v2321_v2 }
  0x3b   : > { %1178 = vmatprep.subr.bf16.mxu1 %v2327_v3  ;;  %v2345_v3 = vld [vmem:[%s3028_s6] sm:$0xff]  }
  0x3c   : > { %2103 = vmatpush3.bf16.msra.mxu0 %v2303_v47 }
  0x3d   : > { %2104 = vmatprep.subr.bf16.mxu0 %v2304_v48 }
  0x3e   : > { %1179 = vmatpush1.bf16.msra.mxu1 %v2325_v4 }
  0x3f   : > { %1180 = vmatprep.subr.bf16.mxu1 %v2331_v5  ;;  %v2346_v5 = vld [vmem:[%s3028_s6 + $0x8] sm:$0xff]  }
  0x40   : > { %2105 = vmatpush3.bf16.msra.mxu0 %v2305_v49 }
  0x41   : > { %2106 = vmatprep.subr.bf16.mxu0 %v2306_v51 }
  0x42   : > { %1181 = vmatpush1.bf16.msra.mxu1 %v2329_v6  ;;  %v2347_v6 = vld [vmem:[%s3028_s6 + $0x10] sm:$0xff]  }
  0x43   : > { %1182 = vmatprep.subr.bf16.mxu1 %v2335_v7  ;;  %v2348_v7 = vld [vmem:[%s3028_s6 + $0x18] sm:$0xff]  }
  0x44   : > { %2107 = vmatpush3.bf16.msra.mxu0 %v2307_v54 }
  0x45   : > { %2108 = vmatprep.subr.bf16.mxu0 %v2308_v55 }
  0x46   : > { %1183 = vmatpush1.bf16.msra.mxu1 %v2333_v8  ;;  %v2349_v8 = vld [vmem:[%s3028_s6 + $0x20] sm:$0xff]  }
  0x47   : > { %1184 = vmatprep.subr.bf16.mxu1 %v2339_v9  ;;  %v2350_v9 = vld [vmem:[%s3028_s6 + $0x28] sm:$0xff]  }
  0x48   : > { %2109 = vmatpush3.bf16.msra.mxu0 %v2309_v56 }
  0x49   : > { %2110 = vmatprep.subr.bf16.mxu0 %v2310_v57 }
  0x4a   : > { %1185 = vmatpush1.bf16.msra.mxu1 %v2337_v10  ;;  %v2351_v10 = vld [vmem:[%s3028_s6 + $0x30] sm:$0xff]  }
  0x4b   : > { %1186 = vmatprep.subr.bf16.mxu1 %v2343_v38  ;;  %v2385_v38 = vld [vmem:[%s3031_s9 + $0x60] sm:$0xff]  }
  0x4c   : > { %2111 = vmatpush3.bf16.msra.mxu0 %v2311_v58 }
  0x4d   : > { %2164 = vmatprep.subr.mxu0 %v2461_v60 }
  0x4e   : > { %1187 = vmatpush1.bf16.msra.mxu1 %v2341_v39  ;;  %v2386_v39 = vld [vmem:[%s3031_s9 + $0x20] sm:$0xff]  }
  0x4f   : > { %924 = vmatmul.mubr.bf16.vlgmr.msra.gmra.mrb[4].mxu0 %v418_v59  ;;  %2189 = vmatprep.subr.mxu1 %v2461_v60 }
  0x50   : > { %2166 = vmatprep.mubr.msk.f32.mxu0 %vm2462_vm0, %v2461_v60 }
 0x102   : > { %v2068_v11 = vpop.f32.mrb[0].mxu0 }
 0x103   : > { %v2069_v13 = vpop.f32.mrb[1].mxu0 }
 0x104   : > { %v2070_v14 = vadd.f32 %v2069_v13, %v2068_v11  ;;  %v2071_v15 = vpop.f32.mrb[2].mxu0  ;;  %v2090_v16 = vpop.f32.mrb[0].mxu1  ;;  %v2352_v11 = vld [vmem:[%s3028_s6 + $0x38] sm:$0xff]   ;;  %v2355_v13 = vld [vmem:[%s3029_s7 + $0x4] ss:$8 sps:$4 sm:$0xff]  }
 0x105   : > { %v2072_v17 = vpop.f32.mrb[3].mxu0  ;;  %v2091_v18 = vpop.f32.mrb[1].mxu1  ;;  %v2361_v15 = vld [vmem:[%s3029_s7 + $0x24] ss:$8 sps:$4 sm:$0xff]  }
 0x106   : > { %v846_v19 = vadd.f32 %v2070_v14, %v1932_v12  ;;  %v2092_v20 = vadd.f32 %v2091_v18, %v2090_v16  ;;  %v2093_v21 = vpop.f32.mrb[2].mxu1  ;;  %v2353_v12 = vld [vmem:[%s3029_s7] ss:$8 sps:$4 sm:$0xff]   ;;  %v2358_v14 = vld [vmem:[%s3029_s7 + $0x14] ss:$8 sps:$4 sm:$0xff]  }
 0x107   : > { %v2094_v22 = vpop.f32.mrb[3].mxu1  ;;  %v2359_v16 = vld [vmem:[%s3029_s7 + $0x20] ss:$8 sps:$4 sm:$0xff]   ;;  %v2364_v17 = vld [vmem:[%s3029_s7 + $0x34] ss:$8 sps:$4 sm:$0xff]  }
 0x108   : > { %v886_v23 = vadd.f32 %v2092_v20, %v846_v19  ;;  %v2362_v18 = vld [vmem:[%s3029_s7 + $0x30] ss:$8 sps:$4 sm:$0xff]   ;;  %v2367_v19 = vld [vmem:[%s3029_s7 + $0x44] ss:$8 sps:$4 sm:$0xff]   ;;  %v2365_v20 = vld [vmem:[%s3029_s7 + $0x40] ss:$8 sps:$4 sm:$0xff]  }
 0x109   : > { %v2370_v21 = vld [vmem:[%s3029_s7 + $0x54] ss:$8 sps:$4 sm:$0xff]   ;;  %v2368_v22 = vld [vmem:[%s3029_s7 + $0x50] ss:$8 sps:$4 sm:$0xff]  }
 0x122   : > { %v2112_v24 = vpop.f32.mrb[4].mxu0 }
 0x123   : > { %v2113_v25 = vpop.f32.mrb[5].mxu0 }
 0x124   : > { %v2114_v26 = vadd.f32 %v2113_v25, %v2112_v24  ;;  %v2115_v27 = vpop.f32.mrb[6].mxu0  ;;  %v2371_v24 = vld [vmem:[%s3029_s7 + $0x60] ss:$8 sps:$4 sm:$0xff]  }
 0x125   : > { %v2116_v28 = vpop.f32.mrb[7].mxu0 }
 0x126   : > { %v926_v29 = vadd.f32 %v2114_v26, %v886_v23  ;;  %v2373_v23 = vld [vmem:[%s3029_s7 + $0x64] ss:$8 sps:$4 sm:$0xff]   ;;  %v2376_v28 = vld [vmem:[%s3029_s7 + $0x74] ss:$8 sps:$4 sm:$0xff]  }
 0x128   : > { %2165 = vmatpush3.msk.msra.mxu0 %vm937_vm1, %v926_v29  ;;  %v2374_v29 = vld [vmem:[%s3029_s7 + $0x70] ss:$8 sps:$4 sm:$0xff]  }
 0x129   : > { %2167 = vmatmul.mubr.msk.f32.vlgmr.msra.gmra.mrb[8].mxu0 %vm933_vm2, %v931_v30  ;;  %2169 = vmatprep.subr.bf16.mxu0 %v2461_v60  ;;  %v2377_v30 = vld [vmem:[%s3031_s9 + $0x40] sm:$0xff]  }
 0x12a   : > { %2170 = vmatpush3.bf16.msra.mxu0 %v2316_v31  ;;  %2185 = vmatprep.mubr.msk.bf16.mxu0 %vm2462_vm0, %v2461_v60  ;;  %v2378_v31 = vld [vmem:[%s3031_s9] sm:$0xff]  }
 0x12b   : > { %2171 = vmatprep.subr.bf16.mxu0 %v2461_v60 }
 0x12e   : > { %2172 = vmatpush3.bf16.msra.mxu0 %v2320_v32  ;;  %v2379_v32 = vld [vmem:[%s3031_s9 + $0x48] sm:$0xff]  }
 0x12f   : > { %2173 = vmatprep.subr.bf16.mxu0 %v2461_v60 }
 0x132   : > { %2174 = vmatpush3.bf16.msra.mxu0 %v2324_v33  ;;  %v2380_v33 = vld [vmem:[%s3031_s9 + $0x8] sm:$0xff]  }
 0x133   : > { %2175 = vmatprep.subr.bf16.mxu0 %v2461_v60 }
 0x136   : > { %2176 = vmatpush3.bf16.msra.mxu0 %v2328_v34  ;;  %v2381_v34 = vld [vmem:[%s3031_s9 + $0x50] sm:$0xff]  }
 0x137   : > { %2177 = vmatprep.subr.bf16.mxu0 %v2461_v60 }
 0x13a   : > { %2178 = vmatpush3.bf16.msra.mxu0 %v2332_v35  ;;  %v2382_v35 = vld [vmem:[%s3031_s9 + $0x10] sm:$0xff]  }
 0x13b   : > { %2179 = vmatprep.subr.bf16.mxu0 %v2461_v60 }
 0x13e   : > { %2180 = vmatpush3.bf16.msra.mxu0 %v2336_v36  ;;  %v2383_v36 = vld [vmem:[%s3031_s9 + $0x58] sm:$0xff]  }
 0x13f   : > { %2181 = vmatprep.subr.bf16.mxu0 %v2461_v60 }
 0x142   : > { %2182 = vmatpush3.bf16.msra.mxu0 %v2340_v37  ;;  %v2384_v37 = vld [vmem:[%s3031_s9 + $0x18] sm:$0xff]  }
 0x143   : > { %2183 = vmatprep.subr.bf16.mxu0 %v2461_v60 }
 0x146   : > { %2184 = vmatpush3.bf16.msra.mxu0 %v2344_v40  ;;  %v2387_v40 = vld [vmem:[%s3031_s9 + $0x68] sm:$0xff]  }
 0x147   : > { %1624 = vmatprep.subr.bf16.mxu0 %v2355_v13 }
 0x1fc   : > { %v1007_v43 = vpop.f32.mrb[8].mxu0 }
 0x1fd   : > { %v2826_v44 = vadd.f32 %v1007_v43, %v932_v42  ;;  %v2168_v45 = vpop.f32.mrb[9].mxu0 }
 0x1ff   : > { %v1011_v46 = vpack.c.bf16 %v2826_v44, %v2826_v44 }
 0x201   : > { %1205 = vmatmul.mubr.bf16.vlgmr.msra.gmra.mrb[4].mxu1 %v1011_v46  ;;  %2186 = vmatmul.mubr.bf16.vlgmr.msra.gmra.mrb[12].mxu0 %v1011_v46 }
 0x202   : > { %2191 = vmatprep.mubr.msk.f32.mxu1 %vm2462_vm0, %v2461_v60  ;;  %1656 = vmatprep.mubr.bf16.mxu0 %v2463_v41  ;;  %v2388_v41 = vld [vmem:[%s3031_s9 + $0x28] sm:$0xff]  }
 0x203   : > { %1625 = vmatpush1.bf16.msra.mxu0 %v2353_v12 }
 0x204   : > { %1626 = vmatprep.subr.bf16.mxu0 %v2358_v14 }
 0x2d4   : > { %v1206_v47 = vpop.f32.mrb[4].mxu1  ;;  %v1247_v48 = vpop.f32.mrb[12].mxu0 }
 0x2d5   : > { %v1208_v49 = vpop.f32.mrb[5].mxu1  ;;  %v2187_v50 = vpop.f32.mrb[13].mxu0  ;;  %v1253_v53 = vmul.f32 0.088388346, %v1206_v47 }
 0x2d6   : > { %v1210_v51 = vpop.f32.mrb[6].mxu1  ;;  %v1250_v52 = vpop.f32.mrb[14].mxu0  ;;  %2190 = vmatpush3.xpose.msra.mxu1 %v1208_v49  ;;  %v2389_v49 = vld [vmem:[%s3031_s9 + $0x70] sm:$0xff]  }
 0x2d7   : > { %v1211_v54 = vpop.f32.mrb[7].mxu1  ;;  %v2188_v55 = vpop.f32.mrb[15].mxu0  ;;  %2194 = vmatprep.subr.mxu1 %v2461_v60  ;;  %v2390_v50 = vld [vmem:[%s3031_s9 + $0x30] sm:$0xff]   ;;  %v2391_v51 = vld [vmem:[%s3031_s9 + $0x78] sm:$0xff]   ;;  %v1534_v52 = vlaneseq }
 0x2d8   : > { %v1532_v55 = vld [vmem:[%s3030_s8] sm:$0x3] }
 0x2d9   : > { %2192 = vmatmul.mubr.f32.vlgmr.msra.gmra.mrb[8].mxu1 %v1253_v53  ;;  %v1535_v53 = vshrl.u32 %v1534_v52, 7 }
 0x2da   : > { %2195 = vmatpush3.msra.mxu1 %v1247_v48  ;;  %2196 = vmatprep.mubr.msk.f32.mxu1 %vm2462_vm0, %v2461_v60 }
 0x2db   : > { %2199 = vmatprep.subr.bf16.mxu1 %v2461_v60  ;;  %v1536_v54 = vsub.s32 0, %v1535_v53 }
 0x3ac   : > { %v1320_v56 = vpop.f32.mrb[8].mxu1 }
 0x3ad   : > { %v2193_v57 = vpop.f32.mrb[9].mxu1  ;;  %v1325_v58 = vsel %vm1324_vm3, %v1320_v56, -inf }
 0x3ae   : > { %1326 = vmax.xlane.f32.xlu0 %v1325_v58  ;;  %v1537_v57 = vrot.slane %v1532_v55, %v1536_v54 }
 0x43b   : > { %v1327_v59 = vpop.xlane.xlu0 %1326 }
 0x43c   : > { %v1328_v61 = vsub.f32 %v1320_v56, %v1327_v59  ;;  %v1540_v56 = vsub.s32 1, %v1535_v53 }
 0x43e   : > { %v1329_v62 = vmul.f32 1.442695, %v1328_v61  ;;  %v1541_v58 = vrot.slane %v1532_v55, %v1540_v56 }
 0x440   : > { %2393 = vpow2.f32 %v1329_v62 }
 0x44a   : > { %v2394_v63 = vpop.eup %2393 }
 0x44b   : > { %v1331_v0 = vsel %vm1324_vm3, %v2394_v63, 0.0 }
 0x44c   : > { %1332 = vadd.xlane.f32.xlu0 %v1331_v0 }
 0x4d9   : > { %v1333_v1 = vpop.xlane.xlu0 %1332 }
 0x4da   : > { %2395 = vrcp.f32 %v1333_v1 }
 0x4e4   : > { %v2396_v2 = vpop.eup %2395 }
 0x4e5   : > { %v1335_v4 = vmul.f32 %v2396_v2, %v2394_v63 }
 0x4e7   : > { %2197 = vmatmul.mubr.msk.f32.vlgmr.msra.gmra.mrb[10].mxu1 %vm1324_vm3, %v1335_v4 }
 0x4e8   : > { %2200 = vmatpush3.bf16.msra.mxu1 %v2345_v3  ;;  %2215 = vmatprep.mubr.msk.bf16.mxu1 %vm2462_vm0, %v2461_v60 }
 0x4e9   : > { %2201 = vmatprep.subr.bf16.mxu1 %v2461_v60 }
 0x4ec   : > { %2202 = vmatpush3.bf16.msra.mxu1 %v2346_v5 }
 0x4ed   : > { %2203 = vmatprep.subr.bf16.mxu1 %v2461_v60 }
 0x4f0   : > { %2204 = vmatpush3.bf16.msra.mxu1 %v2347_v6 }
 0x4f1   : > { %2205 = vmatprep.subr.bf16.mxu1 %v2461_v60 }
 0x4f4   : > { %2206 = vmatpush3.bf16.msra.mxu1 %v2348_v7  ;;  %v2032_v7 = vld [vmem:[%s3032_s10] ss:$0 sm:$0xff] }
 0x4f5   : > { %2207 = vmatprep.subr.bf16.mxu1 %v2461_v60 }
 0x4f8   : > { %2208 = vmatpush3.bf16.msra.mxu1 %v2349_v8 }
 0x4f9   : > { %2209 = vmatprep.subr.bf16.mxu1 %v2461_v60 }
 0x4fc   : > { %2210 = vmatpush3.bf16.msra.mxu1 %v2350_v9 }
 0x4fd   : > { %2211 = vmatprep.subr.bf16.mxu1 %v2461_v60 }
 0x500   : > { %2212 = vmatpush3.bf16.msra.mxu1 %v2351_v10 }
 0x501   : > { %2213 = vmatprep.subr.bf16.mxu1 %v2461_v60  ;;  %v2356_v60 = vld [vmem:[%s3029_s7 + $0x10] ss:$8 sps:$4 sm:$0xff]  }
 0x502   : > { %1627 = vmatpush1.bf16.msra.mxu0 %v2356_v60 }
 0x503   : > { %1628 = vmatprep.subr.bf16.mxu0 %v2361_v15 }
 0x504   : > { %2214 = vmatpush3.bf16.msra.mxu1 %v2352_v11 }
 0x505   : > { %2142 = vmatprep.subr.bf16.mxu1 %v2377_v30 }
 0x506   : > { %1629 = vmatpush1.bf16.msra.mxu0 %v2359_v16 }
 0x507   : > { %1630 = vmatprep.subr.bf16.mxu0 %v2364_v17 }
 0x50a   : > { %1631 = vmatpush1.bf16.msra.mxu0 %v2362_v18 }
 0x50b   : > { %1632 = vmatprep.subr.bf16.mxu0 %v2367_v19 }
 0x50e   : > { %1633 = vmatpush1.bf16.msra.mxu0 %v2365_v20 }
 0x50f   : > { %1634 = vmatprep.subr.bf16.mxu0 %v2370_v21 }
 0x512   : > { %1635 = vmatpush1.bf16.msra.mxu0 %v2368_v22 }
 0x513   : > { %1636 = vmatprep.subr.bf16.mxu0 %v2373_v23 }
 0x516   : > { %1637 = vmatpush1.bf16.msra.mxu0 %v2371_v24 }
 0x517   : > { %1638 = vmatprep.subr.bf16.mxu0 %v2376_v28 }
 0x51a   : > { %1639 = vmatpush1.bf16.msra.mxu0 %v2374_v29 }
 0x5ba   : > { %v1405_v25 = vpop.f32.mrb[10].mxu1 }
 0x5bb   : > { %v1409_v26 = vpack.c.bf16 %v1405_v25, %v1405_v25  ;;  %v2198_v27 = vpop.f32.mrb[11].mxu1 }
 0x5bd   : > { %2216 = vmatmul.mubr.bf16.vlgmr.msra.gmra.mrb[12].mxu1 %v1409_v26 }
 0x5be   : > { %2143 = vmatpush3.bf16.msra.mxu1 %v2378_v31 }
 0x5bf   : > { %2144 = vmatprep.subr.bf16.mxu1 %v2379_v32 }
 0x5c2   : > { %2145 = vmatpush3.bf16.msra.mxu1 %v2380_v33 }
 0x5c3   : > { %2146 = vmatprep.subr.bf16.mxu1 %v2381_v34 }
 0x5c6   : > { %2147 = vmatpush3.bf16.msra.mxu1 %v2382_v35 }
 0x5c7   : > { %2148 = vmatprep.subr.bf16.mxu1 %v2383_v36 }
 0x5ca   : > { %2149 = vmatpush3.bf16.msra.mxu1 %v2384_v37 }
 0x5cb   : > { %2150 = vmatprep.subr.bf16.mxu1 %v2385_v38 }
 0x5ce   : > { %2151 = vmatpush3.bf16.msra.mxu1 %v2386_v39 }
 0x5cf   : > { %2152 = vmatprep.subr.bf16.mxu1 %v2387_v40 }
 0x5d2   : > { %2153 = vmatpush3.bf16.msra.mxu1 %v2388_v41 }
 0x5d3   : > { %2154 = vmatprep.subr.bf16.mxu1 %v2389_v49 }
 0x5d6   : > { %2155 = vmatpush3.bf16.msra.mxu1 %v2390_v50 }
 0x5d7   : > { %2156 = vmatprep.subr.bf16.mxu1 %v2391_v51 }
 0x690   : > { %v1508_v42 = vpop.f32.mrb[12].mxu1 }
 0x691   : > { %v1514_v43 = vadd.f32 %v1508_v42, %v2826_v44  ;;  %v2217_v45 = vpop.f32.mrb[13].mxu1  ;;  %v2392_v44 = vld [vmem:[%s3031_s9 + $0x38] sm:$0xff]  }
 0x692   : > { %v1511_v46 = vpop.f32.mrb[14].mxu1  ;;  %2157 = vmatpush3.bf16.msra.mxu1 %v2392_v44 }
 0x693   : > { %v1515_v47 = vpack.c.bf16 %v1514_v43, %v1514_v43  ;;  %v2218_v48 = vpop.f32.mrb[15].mxu1 }
 0x695   : > { %1657 = vmatmul.mubr.bf16.vlgmr.msra.gmra.mrb[16].mxu0 %v1515_v47 }
 0x768   : > { %v1658_v59 = vpop.f32.mrb[16].mxu0 }
 0x769   : > { %v1659_v61 = vadd.f32 %v1658_v59, %v1537_v57  ;;  %v1660_v62 = vpop.f32.mrb[17].mxu0 }
 0x76a   : > { %v1661_v63 = vadd.f32 %v1660_v62, %v1541_v58  ;;  %v1662_v0 = vpop.f32.mrb[18].mxu0 }
 0x76b   : > { %v1665_v1 = vmax.f32 %v1659_v61, 0.0  ;;  %v1663_v2 = vpop.f32.mrb[19].mxu0 }
 0x76c   : > { %v1666_v3 = vmax.f32 %v1661_v63, 0.0 }
 0x76d   : > { %v1667_v5 = vpack.c.bf16 %v1665_v1, %v1665_v1 }
 0x76e   : > { %v1668_v4 = vpack.c.bf16 %v1666_v3, %v1666_v3 }
 0x770   : > { %1836 = vmatprep.mubr.bf16.mxu1 %v1668_v4 }
 0x771   : > { %1837 = vmatmul.mubr.bf16.vlgmr.msra.gmra.mrb[16].mxu1 %v1667_v5 }
 0x844   : > { %v2158_v6 = vpop.f32.mrb[16].mxu1 }
 0x845   : > { %v2159_v8 = vpop.f32.mrb[17].mxu1 }
 0x846   : > { %v2160_v9 = vadd.f32 %v2159_v8, %v2158_v6  ;;  %v2161_v10 = vpop.f32.mrb[18].mxu1 }
 0x847   : > { %v2162_v11 = vpop.f32.mrb[19].mxu1 }
 0x848   : > { %v1839_v12 = vadd.f32 %v2160_v9, %v2032_v7 }
 0x84a   : > { %v1844_v13 = vadd.f32 %v1839_v12, %v1514_v43 }
 0x84c   : > { %1845 = vst [vmem:[%s391_s29 - $0x7] sm:$0x80] %v1844_v13 }
 0x84d   : > { %2410 = shalt.err (!%p2407_p3)
}
 0x84e   : > { %s2411_s30 = scalar_lea.hbm %s2980_s15, 16  ;;  %s2415_s29 = scalar_lea.hbm %s3033_s11, 32 }
 0x84f   : > { %p2412_p4 = scmp.ne.s32.totalorder %s2980_s15, %s2411_s30  ;;  %p2416_p9 = scmp.lt.u32.totalorder %s2980_s15, %s3033_s11 }
 0x850   : > { %p2417_p10 = scmp.lt.u32.totalorder %s2415_s29, %s2411_s30  ;;  %p2419_p12 = scmp.lt.u32.totalorder %s2411_s30, %s2980_s15 }
 0x851   : > { %p2413_p7 = pnand %p2412_p4, %p2563_p5 }
 0x852   : > { %p2418_p11 = por %p2417_p10, %p2416_p9 }
 0x853   : > { %p2414_p8 = pneg %p2413_p7 }
 0x854   : > { %p2420_p13 = por %p2419_p12, %p2418_p11 }
 0x856   : > { %p2421_p0 = pnand %p2420_p13, %p2414_p8 }
 0x858   : > { %2424 = shalt.err (!%p2421_p0)
}
 0x859   : > { %2220 = dma.vmem_to_hbm [thread:$0]  (%p2563_p5), %s2982_s13, 16, %s2980_s15, %s1847_s16  }
 0x85a PF: > { %p2226_p1 = scmp.ge.s32.totalorder %s2459_s20, 2  ;;  %s1871_s22 = sand.u32 1, %s2447_s17  }
 0x85b   : > { %s1872_s21 = scalar_lea.sflag [#allocation3], %s1871_s22 }
 0x85c   : > { %p2223_p2 = pnand %p2226_p1, %p2567_p6 }
 0x85e   : > { %2442 = dma.done.wait (!%p2223_p2), %s1872_s21, 16  }
 0x85f   : > { %2444 = vsyncadd (!%p2223_p2), %s1872_s21, 4294967280  ;;  %s3039_s19 = sld [smem:[#allocation5_spill]]  ;;  %s3040_s24 = sld [smem:[#allocation6_spill]] }
 0x860   : > { %p21_p3 = scmp.ge.s32.totalorder %s2550_s23, 4   ;;  %s3041_s17 = smov %s2451_s18 }
 0x861   : > { %s3044_s20 = smov %s2550_s23 }
 0x862   :  { %23 = sbr.rel (!%p21_p3) target bundleno = 3 (0x3), region = 102 }
 0x865   : > { %s3042_s18 = smov %s3039_s19  ;;  %s3043_s19 = smov %s3040_s24 }
 0x869   :  { %1876 = vsyncpa [#allocation3], 1 }
 0x86a   :  { %1878 = vsyncpa [#allocation3 + $0x1], 1 }

</bundles_post_ra>
